<compile_context>
chip_gen: v5e
topology: v5e:2x2
jax: 0.10.0
libtpu: 0.0.40
codegen_flags: <defaults>
</compile_context>

<pallas_src>
import jax
import jax.numpy as jnp
from jax.experimental import pallas as pl
from jax.experimental.pallas import tpu as pltpu

HIDDEN = 32      # hidden_size
OUTPUT = 16      # output_size (vocab)


def attn_decoder_kernel(tok_ref,                       # scalar-prefetch: (T,) int32 in SMEM
                        emb_ref, enc_ref, h0_ref, c0_ref,
                        w_attn_ref, ba_ref, w_comb_ref, bc_ref,
                        w_lstm_ref, b_lstm_ref, wo_ref, bo_ref,
                        out_ref,                       # (1, 1, SLAB) per-step packed output
                        h_sc, c_sc):                   # VMEM scratch, persistent across steps
    t = pl.program_id(0)
    H = h_sc.shape[1]
    V = bo_ref.shape[1]
    slab = out_ref.shape[2]

    # seed the recurrent state once
    @pl.when(t == 0)
    def _():
        h_sc[...] = h0_ref[...]
        c_sc[...] = c0_ref[...]

    # embedding lookup (dropout = identity in eval mode); clamp idx: no VMEM bounds check
    idx = jnp.clip(tok_ref[t], 0, emb_ref.shape[0] - 1)
    embedded = emb_ref[pl.ds(idx, 1), :]                                # (1, H)
    h = h_sc[...]                                                       # (1, H)
    c = c_sc[...]                                                       # (1, H)

    # attn = Linear(2H -> H) on cat(embedded, h): single fused (1,2H)@(2H,H) MXU push
    attn_logits = (jnp.dot(jnp.concatenate([embedded, h], axis=1), w_attn_ref[...],
                           preferred_element_type=jnp.float32) + ba_ref[...])
    m = jnp.max(attn_logits, axis=1, keepdims=True)
    e = jnp.exp(attn_logits - m)
    aw = e / jnp.sum(e, axis=1, keepdims=True)                          # softmax, dim=1

    # attn_applied = bmm(attn_weights, encoder_outputs): (1,H) @ (H,H)
    attn_applied = jnp.dot(aw, enc_ref[...], preferred_element_type=jnp.float32)

    # attn_combine = Linear(2H -> H) on cat(embedded, attn_applied): fused matmul
    lstm_x = (jnp.dot(jnp.concatenate([embedded, attn_applied], axis=1), w_comb_ref[...],
                      preferred_element_type=jnp.float32) + bc_ref[...])

    # one-step LSTM cell: fused (1,2H)@(2H,4H) gate matmul, b_ih+b_hh pre-summed
    gates = (jnp.dot(jnp.concatenate([lstm_x, h], axis=1), w_lstm_ref[...],
                     preferred_element_type=jnp.float32) + b_lstm_ref[...])
    sig = jax.nn.sigmoid(gates)          # one EUP pass over the full (1,4H) vreg
    th = jnp.tanh(gates)                 # one EUP pass
    i_g = sig[:, 0 * H:1 * H]
    f_g = sig[:, 1 * H:2 * H]
    g_g = th[:, 2 * H:3 * H]
    o_g = sig[:, 3 * H:4 * H]
    c_new = f_g * c + i_g * g_g
    h_new = o_g * jnp.tanh(c_new)
    h_sc[...] = h_new
    c_sc[...] = c_new

    # out = Linear(H -> V) then log_softmax(dim=1)
    logits = jnp.dot(h_new, wo_ref[...], preferred_element_type=jnp.float32) + bo_ref[...]
    mo = jnp.max(logits, axis=1, keepdims=True)
    z = logits - mo
    logp = z - jnp.log(jnp.sum(jnp.exp(z), axis=1, keepdims=True))

    # pack [logp | h_new | c_new | aw | pad] into one lane-dense slab row
    parts = [logp, h_new, c_new, aw]
    pad = slab - (V + 3 * H)
    if pad:
        parts.append(jnp.zeros((1, pad), jnp.float32))
    out_ref[...] = jnp.concatenate(parts, axis=1).reshape(1, 1, slab)


def attn_decoder_forward(params, tokens, hidden, encoder_outputs):
    """Run T decode steps in one pallas_call.

    tokens: int array of shape (T,) (T=1 reproduces the module's forward exactly).
    hidden: (h, c), each (1, 1, H).
    Returns (log_probs (T, V), (h', c') each (1, 1, H), attn_weights (T, H)).
    """
    h0, c0 = hidden
    V, H = params["emb"].shape
    tokens = jnp.asarray(tokens, jnp.int32).reshape(-1)
    T = int(tokens.shape[0])
    slab = ((V + 3 * H + 127) // 128) * 128

    def resident(shape):
        zeros = (0,) * len(shape)
        return pl.BlockSpec(shape, lambda t, tok, z=zeros: z)

    grid_spec = pltpu.PrefetchScalarGridSpec(
        num_scalar_prefetch=1,
        grid=(T,),
        in_specs=[
            resident((V, H)),           # emb
            resident((H, H)),           # encoder_outputs
            resident((1, H)),           # h0
            resident((1, H)),           # c0
            resident((2 * H, H)),       # w_attn
            resident((1, H)),           # ba
            resident((2 * H, H)),       # w_comb
            resident((1, H)),           # bc
            resident((2 * H, 4 * H)),   # w_lstm
            resident((1, 4 * H)),       # b_lstm
            resident((H, V)),           # wo
            resident((1, V)),           # bo
        ],
        out_specs=pl.BlockSpec((1, 1, slab), lambda t, tok: (t, 0, 0)),
        scratch_shapes=[pltpu.VMEM((1, H), jnp.float32),
                        pltpu.VMEM((1, H), jnp.float32)],
    )

    out = pl.pallas_call(
        attn_decoder_kernel,
        grid_spec=grid_spec,
        out_shape=jax.ShapeDtypeStruct((T, 1, slab), jnp.float32),
        compiler_params=pltpu.CompilerParams(dimension_semantics=("arbitrary",)),
    )(tokens,
      params["emb"], encoder_outputs,
      h0.reshape(1, H).astype(jnp.float32), c0.reshape(1, H).astype(jnp.float32),
      params["w_attn"], params["ba"], params["w_comb"], params["bc"],
      params["w_lstm"], params["b_lstm"], params["wo"], params["bo"])

    out2 = out.reshape(T, slab)
    logp = out2[:, :V]
    h_seq = out2[:, V:V + H]
    c_seq = out2[:, V + H:V + 2 * H]
    aw = out2[:, V + 2 * H:V + 3 * H]
    h_new = h_seq[-1].reshape(1, 1, H)
    c_new = c_seq[-1].reshape(1, 1, H)
    return logp, (h_new, c_new), aw


def init_params(key, hidden_size, output_size):
    """Deterministic parameter init mirroring the PyTorch module's shapes (pre-fused)."""
    H, V = hidden_size, output_size
    ks = jax.random.split(key, 11)

    def unif(k, shape, fan_in):
        b = 1.0 / jnp.sqrt(float(fan_in))
        return jax.random.uniform(k, shape, jnp.float32, -b, b)

    emb = jax.random.normal(ks[0], (V, H), jnp.float32)                 # nn.Embedding ~ N(0,1)
    attn_w = unif(ks[1], (H, 2 * H), 2 * H)                             # nn.Linear(2H, H)
    attn_b = unif(ks[2], (H,), 2 * H)
    comb_w = unif(ks[3], (H, 2 * H), 2 * H)                             # nn.Linear(2H, H)
    comb_b = unif(ks[4], (H,), 2 * H)
    wih = unif(ks[5], (4 * H, H), H)                                    # LSTM weight_ih_l0
    whh = unif(ks[6], (4 * H, H), H)                                    # LSTM weight_hh_l0
    bih = unif(ks[7], (4 * H,), H)
    bhh = unif(ks[8], (4 * H,), H)
    wo = jnp.sqrt(2.0 / (H + V)) * jax.random.normal(ks[9], (V, H), jnp.float32)  # xavier_normal_
    bo = unif(ks[10], (V,), H)

    return {
        "emb": emb,
        "w_attn": attn_w.T,                                 # (2H, H): cat(emb, h) @ w_attn
        "ba": attn_b.reshape(1, H),
        "w_comb": comb_w.T,                                 # (2H, H): cat(emb, applied) @ w_comb
        "bc": comb_b.reshape(1, H),
        "w_lstm": jnp.concatenate([wih.T, whh.T], axis=0),  # (2H, 4H): cat(x, h) @ w_lstm
        "b_lstm": (bih + bhh).reshape(1, 4 * H),
        "wo": wo.T, "bo": bo.reshape(1, V),
    }


def reference_forward(params, tokens, hidden, encoder_outputs):
    """Pure-JAX reference of the same per-step math, looped over tokens."""
    V, H = params["emb"].shape
    h = hidden[0].reshape(1, H)
    c = hidden[1].reshape(1, H)
    logps, aws = [], []
    for tkn in [int(x) for x in tokens]:
        embedded = params["emb"][tkn].reshape(1, H)
        attn_logits = jnp.concatenate([embedded, h], axis=1) @ params["w_attn"] + params["ba"]
        aw = jax.nn.softmax(attn_logits, axis=1)
        attn_applied = aw @ encoder_outputs
        lstm_x = jnp.concatenate([embedded, attn_applied], axis=1) @ params["w_comb"] + params["bc"]
        gates = jnp.concatenate([lstm_x, h], axis=1) @ params["w_lstm"] + params["b_lstm"]
        i_g = jax.nn.sigmoid(gates[:, 0 * H:1 * H])
        f_g = jax.nn.sigmoid(gates[:, 1 * H:2 * H])
        g_g = jnp.tanh(gates[:, 2 * H:3 * H])
        o_g = jax.nn.sigmoid(gates[:, 3 * H:4 * H])
        c = f_g * c + i_g * g_g
        h = o_g * jnp.tanh(c)
        logits = h @ params["wo"] + params["bo"]
        logps.append(jax.nn.log_softmax(logits, axis=1))
        aws.append(aw)
    return (jnp.concatenate(logps, axis=0),
            (h.reshape(1, 1, H), c.reshape(1, 1, H)),
            jnp.concatenate(aws, axis=0))


if __name__ == "__main__":
    key = jax.random.PRNGKey(0)
    k_p, k_e = jax.random.split(key)

    params = init_params(k_p, HIDDEN, OUTPUT)
    h0 = jnp.zeros((1, 1, HIDDEN), jnp.float32)
    c0 = jnp.zeros((1, 1, HIDDEN), jnp.float32)
    encoder_outputs = jax.random.normal(k_e, (HIDDEN, HIDDEN), jnp.float32)

    # multi-step decode (teacher-forced token sequence), all steps in ONE pallas_call
    tokens = jnp.array([3, 1, 7, 0, 15, 9], jnp.int32)
    logp, (h1, c1), aw = attn_decoder_forward(params, tokens, (h0, c0), encoder_outputs)
    jax.block_until_ready((logp, h1, c1, aw))

    r_logp, (r_h1, r_c1), r_aw = reference_forward(params, tokens, (h0, c0), encoder_outputs)
    assert jnp.allclose(logp, r_logp, atol=1e-5), "log-probs mismatch"
    assert jnp.allclose(h1, r_h1, atol=1e-5), "hidden mismatch"
    assert jnp.allclose(c1, r_c1, atol=1e-5), "cell mismatch"
    assert jnp.allclose(aw, r_aw, atol=1e-5), "attn weights mismatch"

    # single-step call == the PyTorch module's forward
    logp1, (h1a, c1a), aw1 = attn_decoder_forward(params, jnp.array([3], jnp.int32),
                                                  (h0, c0), encoder_outputs)
    jax.block_until_ready((logp1, h1a, c1a, aw1))
    r1_logp, (r1_h, r1_c), r1_aw = reference_forward(params, jnp.array([3], jnp.int32),
                                                     (h0, c0), encoder_outputs)
    assert jnp.allclose(logp1, r1_logp, atol=1e-5), "single-step log-probs mismatch"
    assert jnp.allclose(h1a, r1_h, atol=1e-5), "single-step hidden mismatch"
    assert jnp.allclose(c1a, r1_c, atol=1e-5), "single-step cell mismatch"
    assert jnp.allclose(aw1, r1_aw, atol=1e-5), "single-step attn weights mismatch"

    print("KERNEL_OK")
</pallas_src>

<mosaic_0001>
module attributes {stable_mosaic.version = 11 : i64} {
  func.func @attn_decoder_kernel(%arg0: i32, %arg1: memref<6xi32, #tpu.memory_space<smem>>, %arg2: memref<16x32xf32, #tpu.memory_space<vmem>>, %arg3: memref<32x32xf32, #tpu.memory_space<vmem>>, %arg4: memref<1x32xf32, #tpu.memory_space<vmem>>, %arg5: memref<1x32xf32, #tpu.memory_space<vmem>>, %arg6: memref<64x32xf32, #tpu.memory_space<vmem>>, %arg7: memref<1x32xf32, #tpu.memory_space<vmem>>, %arg8: memref<64x32xf32, #tpu.memory_space<vmem>>, %arg9: memref<1x32xf32, #tpu.memory_space<vmem>>, %arg10: memref<64x128xf32, #tpu.memory_space<vmem>>, %arg11: memref<1x128xf32, #tpu.memory_space<vmem>>, %arg12: memref<32x16xf32, #tpu.memory_space<vmem>>, %arg13: memref<1x16xf32, #tpu.memory_space<vmem>>, %arg14: memref<1x1x128xf32, #tpu.memory_space<vmem>>, %arg15: memref<1x32xf32, #tpu.memory_space<vmem>>, %arg16: memref<1x32xf32, #tpu.memory_space<vmem>>) attributes {dimension_semantics = [#tpu.dimension_semantics<arbitrary>], iteration_bounds = array<i64: 6>, scalar_prefetch = 1 : i64, scratch_operands = 2 : i64, tpu.core_type = #tpu.core_type<tc>, window_params = [{pipeline_mode = #tpu.pipeline_mode<synchronous>, transform_indices = @transform_0, window_bounds = array<i64: 16, 32>}, {pipeline_mode = #tpu.pipeline_mode<synchronous>, transform_indices = @transform_1, window_bounds = array<i64: 32, 32>}, {pipeline_mode = #tpu.pipeline_mode<synchronous>, transform_indices = @transform_2, window_bounds = array<i64: 1, 32>}, {pipeline_mode = #tpu.pipeline_mode<synchronous>, transform_indices = @transform_3, window_bounds = array<i64: 1, 32>}, {pipeline_mode = #tpu.pipeline_mode<synchronous>, transform_indices = @transform_4, window_bounds = array<i64: 64, 32>}, {pipeline_mode = #tpu.pipeline_mode<synchronous>, transform_indices = @transform_5, window_bounds = array<i64: 1, 32>}, {pipeline_mode = #tpu.pipeline_mode<synchronous>, transform_indices = @transform_6, window_bounds = array<i64: 64, 32>}, {pipeline_mode = #tpu.pipeline_mode<synchronous>, transform_indices = @transform_7, window_bounds = array<i64: 1, 32>}, {pipeline_mode = #tpu.pipeline_mode<synchronous>, transform_indices = @transform_8, window_bounds = array<i64: 64, 128>}, {pipeline_mode = #tpu.pipeline_mode<synchronous>, transform_indices = @transform_9, window_bounds = array<i64: 1, 128>}, {pipeline_mode = #tpu.pipeline_mode<synchronous>, transform_indices = @transform_10, window_bounds = array<i64: 32, 16>}, {pipeline_mode = #tpu.pipeline_mode<synchronous>, transform_indices = @transform_11, window_bounds = array<i64: 1, 16>}, {transform_indices = @transform_12, window_bounds = array<i64: 1, 1, 128>}]} {
    %c0_i32 = arith.constant 0 : i32
    %0 = arith.cmpi eq, %arg0, %c0_i32 : i32
    %1 = arith.extui %0 : i1 to i32
    %c0_i32_0 = arith.constant 0 : i32
    %2 = arith.cmpi ne, %1, %c0_i32_0 : i32
    scf.if %2 {
      %c0_41 = arith.constant 0 : index
      %c0_42 = arith.constant 0 : index
      %72 = vector.load %arg4[%c0_41, %c0_42] : memref<1x32xf32, #tpu.memory_space<vmem>>, vector<1x32xf32>
      %c0_43 = arith.constant 0 : index
      %c0_44 = arith.constant 0 : index
      %73 = vector.load %arg15[%c0_43, %c0_44] : memref<1x32xf32, #tpu.memory_space<vmem>>, vector<1x32xf32>
      tpu.vector_store %arg15[%c0_43, %c0_44], %72 {strides = array<i32>} : memref<1x32xf32, #tpu.memory_space<vmem>>, vector<1x32xf32>,
      %c0_45 = arith.constant 0 : index
      %c0_46 = arith.constant 0 : index
      %74 = vector.load %arg5[%c0_45, %c0_46] : memref<1x32xf32, #tpu.memory_space<vmem>>, vector<1x32xf32>
      %c0_47 = arith.constant 0 : index
      %c0_48 = arith.constant 0 : index
      %75 = vector.load %arg16[%c0_47, %c0_48] : memref<1x32xf32, #tpu.memory_space<vmem>>, vector<1x32xf32>
      tpu.vector_store %arg16[%c0_47, %c0_48], %74 {strides = array<i32>} : memref<1x32xf32, #tpu.memory_space<vmem>>, vector<1x32xf32>,
    } else {
    }
    %3 = arith.index_cast %arg0 : i32 to index
    %4 = memref.load %arg1[%3] : memref<6xi32, #tpu.memory_space<smem>>
    %c0_i32_1 = arith.constant 0 : i32
    %c15_i32 = arith.constant 15 : i32
    %5 = arith.maxsi %c0_i32_1, %4 : i32
    %6 = arith.minsi %c15_i32, %5 : i32
    %7 = arith.index_cast %6 : i32 to index
    %c0 = arith.constant 0 : index
    %8 = vector.load %arg2[%7, %c0] : memref<16x32xf32, #tpu.memory_space<vmem>>, vector<1x32xf32>
    %c0_2 = arith.constant 0 : index
    %c0_3 = arith.constant 0 : index
    %9 = vector.load %arg15[%c0_2, %c0_3] : memref<1x32xf32, #tpu.memory_space<vmem>>, vector<1x32xf32>
    %c0_4 = arith.constant 0 : index
    %c0_5 = arith.constant 0 : index
    %10 = vector.load %arg16[%c0_4, %c0_5] : memref<1x32xf32, #tpu.memory_space<vmem>>, vector<1x32xf32>
    %11 = tpu.concatenate %8, %9 in 1 : vector<1x32xf32>, vector<1x32xf32> -> vector<1x64xf32>
    %c0_6 = arith.constant 0 : index
    %c0_7 = arith.constant 0 : index
    %12 = vector.load %arg6[%c0_6, %c0_7] : memref<64x32xf32, #tpu.memory_space<vmem>>, vector<64x32xf32>
    %cst = arith.constant dense<0.000000e+00> : vector<1x32xf32>
    %13 = tpu.matmul %11, %12, %cst {dimension_numbers = #tpu.dot_dimension_numbers<[1], [0], [0], [1], [0, 0, 1, 1], [], []>} : vector<1x64xf32>, vector<64x32xf32>, vector<1x32xf32> -> vector<1x32xf32>
    %c0_8 = arith.constant 0 : index
    %c0_9 = arith.constant 0 : index
    %14 = vector.load %arg7[%c0_8, %c0_9] : memref<1x32xf32, #tpu.memory_space<vmem>>, vector<1x32xf32>
    %15 = arith.addf %13, %14 : vector<1x32xf32>
    %cst_10 = arith.constant dense<0xFF800000> : vector<1xf32>
    %16 = vector.multi_reduction <maximumf>, %15, %cst_10 [1] : vector<1x32xf32> to vector<1xf32>
    %17 = vector.shape_cast %16 : vector<1xf32> to vector<1x1xf32>
    %18 = vector.broadcast %17 : vector<1x1xf32> to vector<1x32xf32>
    %19 = arith.subf %15, %18 : vector<1x32xf32>
    %20 = math.exp %19 : vector<1x32xf32>
    %cst_11 = arith.constant dense<0.000000e+00> : vector<1xf32>
    %21 = vector.multi_reduction <add>, %20, %cst_11 [1] : vector<1x32xf32> to vector<1xf32>
    %22 = vector.shape_cast %21 : vector<1xf32> to vector<1x1xf32>
    %23 = vector.broadcast %22 : vector<1x1xf32> to vector<1x32xf32>
    %24 = arith.divf %20, %23 : vector<1x32xf32>
    %c0_12 = arith.constant 0 : index
    %c0_13 = arith.constant 0 : index
    %25 = vector.load %arg3[%c0_12, %c0_13] : memref<32x32xf32, #tpu.memory_space<vmem>>, vector<32x32xf32>
    %cst_14 = arith.constant dense<0.000000e+00> : vector<1x32xf32>
    %26 = tpu.matmul %24, %25, %cst_14 {dimension_numbers = #tpu.dot_dimension_numbers<[1], [0], [0], [1], [0, 0, 1, 1], [], []>} : vector<1x32xf32>, vector<32x32xf32>, vector<1x32xf32> -> vector<1x32xf32>
    %27 = tpu.concatenate %8, %26 in 1 : vector<1x32xf32>, vector<1x32xf32> -> vector<1x64xf32>
    %c0_15 = arith.constant 0 : index
    %c0_16 = arith.constant 0 : index
    %28 = vector.load %arg8[%c0_15, %c0_16] : memref<64x32xf32, #tpu.memory_space<vmem>>, vector<64x32xf32>
    %cst_17 = arith.constant dense<0.000000e+00> : vector<1x32xf32>
    %29 = tpu.matmul %27, %28, %cst_17 {dimension_numbers = #tpu.dot_dimension_numbers<[1], [0], [0], [1], [0, 0, 1, 1], [], []>} : vector<1x64xf32>, vector<64x32xf32>, vector<1x32xf32> -> vector<1x32xf32>
    %c0_18 = arith.constant 0 : index
    %c0_19 = arith.constant 0 : index
    %30 = vector.load %arg9[%c0_18, %c0_19] : memref<1x32xf32, #tpu.memory_space<vmem>>, vector<1x32xf32>
    %31 = arith.addf %29, %30 : vector<1x32xf32>
    %32 = tpu.concatenate %31, %9 in 1 : vector<1x32xf32>, vector<1x32xf32> -> vector<1x64xf32>
    %c0_20 = arith.constant 0 : index
    %c0_21 = arith.constant 0 : index
    %33 = vector.load %arg10[%c0_20, %c0_21] : memref<64x128xf32, #tpu.memory_space<vmem>>, vector<64x128xf32>
    %cst_22 = arith.constant dense<0.000000e+00> : vector<1x128xf32>
    %34 = tpu.matmul %32, %33, %cst_22 {dimension_numbers = #tpu.dot_dimension_numbers<[1], [0], [0], [1], [0, 0, 1, 1], [], []>} : vector<1x64xf32>, vector<64x128xf32>, vector<1x128xf32> -> vector<1x128xf32>
    %c0_23 = arith.constant 0 : index
    %c0_24 = arith.constant 0 : index
    %35 = vector.load %arg11[%c0_23, %c0_24] : memref<1x128xf32, #tpu.memory_space<vmem>>, vector<1x128xf32>
    %36 = arith.addf %34, %35 : vector<1x128xf32>
    %37 = arith.negf %36 : vector<1x128xf32>
    %38 = math.exp %37 : vector<1x128xf32>
    %cst_25 = arith.constant 1.000000e+00 : f32
    %39 = vector.broadcast %cst_25 : f32 to vector<1x128xf32>
    %40 = arith.addf %39, %38 : vector<1x128xf32>
    %41 = arith.divf %39, %40 : vector<1x128xf32>
    %42 = math.tanh %36 : vector<1x128xf32>
    %43 = vector.extract_strided_slice %41 {offsets = [0, 0], sizes = [1, 32], strides = [1, 1]} : vector<1x128xf32> to vector<1x32xf32>
    %44 = vector.extract_strided_slice %41 {offsets = [0, 32], sizes = [1, 32], strides = [1, 1]} : vector<1x128xf32> to vector<1x32xf32>
    %45 = vector.extract_strided_slice %42 {offsets = [0, 64], sizes = [1, 32], strides = [1, 1]} : vector<1x128xf32> to vector<1x32xf32>
    %46 = vector.extract_strided_slice %41 {offsets = [0, 96], sizes = [1, 32], strides = [1, 1]} : vector<1x128xf32> to vector<1x32xf32>
    %47 = arith.mulf %44, %10 : vector<1x32xf32>
    %48 = arith.mulf %43, %45 : vector<1x32xf32>
    %49 = arith.addf %47, %48 : vector<1x32xf32>
    %50 = math.tanh %49 : vector<1x32xf32>
    %51 = arith.mulf %46, %50 : vector<1x32xf32>
    %c0_26 = arith.constant 0 : index
    %c0_27 = arith.constant 0 : index
    %52 = vector.load %arg15[%c0_26, %c0_27] : memref<1x32xf32, #tpu.memory_space<vmem>>, vector<1x32xf32>
    tpu.vector_store %arg15[%c0_26, %c0_27], %51 {strides = array<i32>} : memref<1x32xf32, #tpu.memory_space<vmem>>, vector<1x32xf32>,
    %c0_28 = arith.constant 0 : index
    %c0_29 = arith.constant 0 : index
    %53 = vector.load %arg16[%c0_28, %c0_29] : memref<1x32xf32, #tpu.memory_space<vmem>>, vector<1x32xf32>
    tpu.vector_store %arg16[%c0_28, %c0_29], %49 {strides = array<i32>} : memref<1x32xf32, #tpu.memory_space<vmem>>, vector<1x32xf32>,
    %c0_30 = arith.constant 0 : index
    %c0_31 = arith.constant 0 : index
    %54 = vector.load %arg12[%c0_30, %c0_31] : memref<32x16xf32, #tpu.memory_space<vmem>>, vector<32x16xf32>
    %cst_32 = arith.constant dense<0.000000e+00> : vector<1x16xf32>
    %55 = tpu.matmul %51, %54, %cst_32 {dimension_numbers = #tpu.dot_dimension_numbers<[1], [0], [0], [1], [0, 0, 1, 1], [], []>} : vector<1x32xf32>, vector<32x16xf32>, vector<1x16xf32> -> vector<1x16xf32>
    %c0_33 = arith.constant 0 : index
    %c0_34 = arith.constant 0 : index
    %56 = vector.load %arg13[%c0_33, %c0_34] : memref<1x16xf32, #tpu.memory_space<vmem>>, vector<1x16xf32>
    %57 = arith.addf %55, %56 : vector<1x16xf32>
    %cst_35 = arith.constant dense<0xFF800000> : vector<1xf32>
    %58 = vector.multi_reduction <maximumf>, %57, %cst_35 [1] : vector<1x16xf32> to vector<1xf32>
    %59 = vector.shape_cast %58 : vector<1xf32> to vector<1x1xf32>
    %60 = vector.broadcast %59 : vector<1x1xf32> to vector<1x16xf32>
    %61 = arith.subf %57, %60 : vector<1x16xf32>
    %62 = math.exp %61 : vector<1x16xf32>
    %cst_36 = arith.constant dense<0.000000e+00> : vector<1xf32>
    %63 = vector.multi_reduction <add>, %62, %cst_36 [1] : vector<1x16xf32> to vector<1xf32>
    %64 = vector.shape_cast %63 : vector<1xf32> to vector<1x1xf32>
    %65 = math.log %64 : vector<1x1xf32>
    %66 = vector.broadcast %65 : vector<1x1xf32> to vector<1x16xf32>
    %67 = arith.subf %61, %66 : vector<1x16xf32>
    %cst_37 = arith.constant 0.000000e+00 : f32
    %68 = vector.broadcast %cst_37 : f32 to vector<1x16xf32>
    %69 = tpu.concatenate %67, %51, %49, %24, %68 in 1 : vector<1x16xf32>, vector<1x32xf32>, vector<1x32xf32>, vector<1x32xf32>, vector<1x16xf32> -> vector<1x128xf32>
    %70 = vector.shape_cast %69 : vector<1x128xf32> to vector<1x1x128xf32>
    %c0_38 = arith.constant 0 : index
    %c0_39 = arith.constant 0 : index
    %c0_40 = arith.constant 0 : index
    %71 = vector.load %arg14[%c0_38, %c0_39, %c0_40] : memref<1x1x128xf32, #tpu.memory_space<vmem>>, vector<1x1x128xf32>
    tpu.vector_store %arg14[%c0_38, %c0_39, %c0_40], %70 {strides = array<i32>} : memref<1x1x128xf32, #tpu.memory_space<vmem>>, vector<1x1x128xf32>,
    return
  }
  func.func @transform_0(%arg0: i32, %arg1: memref<6xi32, #tpu.memory_space<smem>>) -> (i32, i32) {
    %c0_i32 = arith.constant 0 : i32
    %c0_i32_0 = arith.constant 0 : i32
    %c0_i32_1 = arith.constant 0 : i32
    return %c0_i32, %c0_i32_0 : i32, i32
  }
  func.func @transform_1(%arg0: i32, %arg1: memref<6xi32, #tpu.memory_space<smem>>) -> (i32, i32) {
    %c0_i32 = arith.constant 0 : i32
    %c0_i32_0 = arith.constant 0 : i32
    %c0_i32_1 = arith.constant 0 : i32
    return %c0_i32, %c0_i32_0 : i32, i32
  }
  func.func @transform_2(%arg0: i32, %arg1: memref<6xi32, #tpu.memory_space<smem>>) -> (i32, i32) {
    %c0_i32 = arith.constant 0 : i32
    %c0_i32_0 = arith.constant 0 : i32
    %c0_i32_1 = arith.constant 0 : i32
    return %c0_i32, %c0_i32_0 : i32, i32
  }
  func.func @transform_3(%arg0: i32, %arg1: memref<6xi32, #tpu.memory_space<smem>>) -> (i32, i32) {
    %c0_i32 = arith.constant 0 : i32
    %c0_i32_0 = arith.constant 0 : i32
    %c0_i32_1 = arith.constant 0 : i32
    return %c0_i32, %c0_i32_0 : i32, i32
  }
  func.func @transform_4(%arg0: i32, %arg1: memref<6xi32, #tpu.memory_space<smem>>) -> (i32, i32) {
    %c0_i32 = arith.constant 0 : i32
    %c0_i32_0 = arith.constant 0 : i32
    %c0_i32_1 = arith.constant 0 : i32
    return %c0_i32, %c0_i32_0 : i32, i32
  }
  func.func @transform_5(%arg0: i32, %arg1: memref<6xi32, #tpu.memory_space<smem>>) -> (i32, i32) {
    %c0_i32 = arith.constant 0 : i32
    %c0_i32_0 = arith.constant 0 : i32
    %c0_i32_1 = arith.constant 0 : i32
    return %c0_i32, %c0_i32_0 : i32, i32
  }
  func.func @transform_6(%arg0: i32, %arg1: memref<6xi32, #tpu.memory_space<smem>>) -> (i32, i32) {
    %c0_i32 = arith.constant 0 : i32
    %c0_i32_0 = arith.constant 0 : i32
    %c0_i32_1 = arith.constant 0 : i32
    return %c0_i32, %c0_i32_0 : i32, i32
  }
  func.func @transform_7(%arg0: i32, %arg1: memref<6xi32, #tpu.memory_space<smem>>) -> (i32, i32) {
    %c0_i32 = arith.constant 0 : i32
    %c0_i32_0 = arith.constant 0 : i32
    %c0_i32_1 = arith.constant 0 : i32
    return %c0_i32, %c0_i32_0 : i32, i32
  }
  func.func @transform_8(%arg0: i32, %arg1: memref<6xi32, #tpu.memory_space<smem>>) -> (i32, i32) {
    %c0_i32 = arith.constant 0 : i32
    %c0_i32_0 = arith.constant 0 : i32
    %c0_i32_1 = arith.constant 0 : i32
    return %c0_i32, %c0_i32_0 : i32, i32
  }
  func.func @transform_9(%arg0: i32, %arg1: memref<6xi32, #tpu.memory_space<smem>>) -> (i32, i32) {
    %c0_i32 = arith.constant 0 : i32
    %c0_i32_0 = arith.constant 0 : i32
    %c0_i32_1 = arith.constant 0 : i32
    return %c0_i32, %c0_i32_0 : i32, i32
  }
  func.func @transform_10(%arg0: i32, %arg1: memref<6xi32, #tpu.memory_space<smem>>) -> (i32, i32) {
    %c0_i32 = arith.constant 0 : i32
    %c0_i32_0 = arith.constant 0 : i32
    %c0_i32_1 = arith.constant 0 : i32
    return %c0_i32, %c0_i32_0 : i32, i32
  }
  func.func @transform_11(%arg0: i32, %arg1: memref<6xi32, #tpu.memory_space<smem>>) -> (i32, i32) {
    %c0_i32 = arith.constant 0 : i32
    %c0_i32_0 = arith.constant 0 : i32
    %c0_i32_1 = arith.constant 0 : i32
    return %c0_i32, %c0_i32_0 : i32, i32
  }
  func.func @transform_12(%arg0: i32, %arg1: memref<6xi32, #tpu.memory_space<smem>>) -> (i32, i32, i32) {
    %c0_i32 = arith.constant 0 : i32
    %c0_i32_0 = arith.constant 0 : i32
    %c0_i32_1 = arith.constant 0 : i32
    return %arg0, %c0_i32, %c0_i32_0 : i32, i32, i32
  }
}

</mosaic_0001>

<bundles_post_ra>
// kernel: tpu_custom_call.1
= control target key start
LH: loop header
LB: loop body
LE: loop exit
PB: predicated region body
PF: predicated region fallthrough
CT: control target
= control target key end

     0   :  { %s908_s28 = smov [#allocation5]   ;;  %s1226_s0 = inlined_call_operand.vmem [shape: s32[6], index: 0, kind: input, shape index: {}]   ;;  %s1227_s1 = inlined_call_operand.vmem [shape: f32[16,32], index: 1, kind: input, shape index: {}]   ;;  %s1228_s2 = inlined_call_operand.vmem [shape: f32[32,32], index: 2, kind: input, shape index: {}]   ;;  %s1229_s3 = inlined_call_operand.vmem [shape: f32[1,32], index: 3, kind: input, shape index: {}]   ;;  %s1230_s4 = inlined_call_operand.vmem [shape: f32[1,32], index: 4, kind: input, shape index: {}]   ;;  %s1231_s5 = inlined_call_operand.vmem [shape: f32[64,32], index: 5, kind: input, shape index: {}]   ;;  %s1232_s6 = inlined_call_operand.vmem [shape: f32[1,32], index: 6, kind: input, shape index: {}]   ;;  %s1233_s7 = inlined_call_operand.vmem [shape: f32[64,32], index: 7, kind: input, shape index: {}]   ;;  %s1234_s8 = inlined_call_operand.vmem [shape: f32[1,32], index: 8, kind: input, shape index: {}]   ;;  %s1235_s9 = inlined_call_operand.vmem [shape: f32[64,128], index: 9, kind: input, shape index: {}]   ;;  %s1236_s10 = inlined_call_operand.vmem [shape: f32[1,128], index: 10, kind: input, shape index: {}]   ;;  %s1237_s11 = inlined_call_operand.vmem [shape: f32[32,16], index: 11, kind: input, shape index: {}]   ;;  %s1238_s12 = inlined_call_operand.vmem [shape: f32[1,16], index: 12, kind: input, shape index: {}]   ;;  %s1239_s13 = inlined_call_operand.hbm [shape: f32[6,1,128], index: 13, kind: output, shape index: {}]  }
   0x1   :  { %1243 = sst [smem:[#allocation10_spill]] %s1227_s1  ;;  %s19_s27 = sshll.u32 %s1226_s0, 4  ;;  %s20_s27 = int_to_ptr.vmem [resolvable:$true] %s19_s27 }
   0x2   :  { %1244 = sst [smem:[#allocation11_spill]] %s1229_s3 }
   0x3   :  { %1245 = sst [smem:[#allocation12_spill]] %s1230_s4 }
   0x4   :  { %22 = dma.vmem_to_smem %s20_s27, 16, %s908_s28, [#allocation4] }
   0x5   :  { %886 = dma.done.wait [#allocation4], 16 }
   0x6   :  { %887 = vsyncadd [#allocation4], 4294967280 }
   0x7   :  { %25 = sfence }
   0x8   :  { %26 = vsyncpa [#allocation7], 0 }
   0x9   :  { %28 = vsyncpa [#allocation7 + $0x1], 0  ;;  %s988_s29 = smov 0   ;;  %s990_s30 = smov 0  }
   0xa   :  { %s992_s14 = smov 0   ;;  %s994_s15 = smov 0  }
   0xb LB: > { %s1009_s0 = sadd.s32 4294967295, %s906_s15   ;;  %s747_s16 = sadd.s32 4294967294, %s906_s15   ;;  %s906_s15 = sphi %s994_s15, %s1256_s15   ;;  %s902_s14 = sphi %s992_s14, %s1255_s14   ;;  %s898_s30 = sphi %s990_s30, %s1254_s30   ;;  %s894_s29 = sphi %s988_s29, %s1253_s29  }
   0xc   : > { %s1013_s17 = sadd.s32 1, %s906_s15   ;;  %s293_s18 = sadd.s32 1, %s902_s14 }
   0xd   : > { %s290_s19 = ssub.s32 %s906_s15, %s1013_s17  ;;  %p303_p0 = scmp.ne.s32.totalorder %s902_s14, %s898_s30 }
   0xe   : > { %p291_p1 = scmp.eq.s32.totalorder %s290_s19, 0  ;;  %p304_p2 = scmp.eq.s32.totalorder %s1009_s0, 5 }
   0xf   : > { %p309_p3 = scmp.ne.s32.totalorder %s898_s30, %s894_s29  ;;  %p310_p4 = scmp.eq.s32.totalorder %s747_s16, 5 }
  0x10   : > { %s1024_s20 = scalar_select %p291_p1, %s902_s14, %s293_s18  }
  0x11   : > { %p1026_p5 = por %p304_p2, %p303_p0  ;;  %p1030_p6 = por %p310_p4, %p309_p3 }
  0x12   : > { %p749_p7 = scmp.ge.s32.totalorder %s906_s15, 1  ;;  %p364_p8 = scmp.lt.s32.totalorder %s906_s15, 7 }
  0x14   : > { %p365_p9 = pnand %p749_p7, %p364_p8 }
  0x15   : > { %s1240_s23 = sand.u32 (!%p365_p9), 1, %s898_s30   ;;  %p750_p10 = scmp.ne.s32.totalorder (!%p365_p9), %s1009_s0, 0 }
  0x16   : > { %368 = sbr.rel (%p365_p9) target bundleno = 1836 (0x72c), region = 68  ;;  %s1039_s24 = scalar_lea.vmem (!%p365_p9), [#allocation6], %s1240_s23 }
  0x1b   : > { %403 = sbr.rel (%p750_p10) target bundleno = 36 (0x24), region = 72  ;;  %s1248_s3 = sld [smem:[#allocation11_spill]] (!%p750_p10) }
  0x1c   : > { %s1249_s4 = sld [smem:[#allocation12_spill]] (!%p750_p10) }
  0x20   : > { %vm405_vm0 = vcmask 253952  }
  0x21   : > { %v404_v0 = vld [vmem:[%s1248_s3] sm:$0x1] }
  0x22   : > { %v407_v1 = vld [vmem:[%s1249_s4] sm:$0x1]  ;;  %406 = vst.msk [vmem:[#allocation2] sm:$0x1] %vm405_vm0, %v404_v0 }
  0x23   : > { %408 = vst.msk [vmem:[#allocation3] sm:$0x1] %vm405_vm0, %v407_v1 }
  0x24 PF: > { %v432_v3 = vld [vmem:[%s1231_s5 + $0x38] sm:$0xff]  ;;  %v431_v4 = vld [vmem:[%s1231_s5 + $0x30] sm:$0xff]  ;;  %s1241_s25 = smov 32   ;;  %v430_v5 = vld [vmem:[%s1231_s5 + $0x28] sm:$0xff]  ;;  %s409_s27 = sld [smem:[#allocation5 + %s1009_s0]]  ;;  %vm423_vm1 = vcmask 261120  }
  0x25   : > { %446 = vmatpush.msra.mxu0 %v432_v3  ;;  %v429_v6 = vld [vmem:[%s1231_s5 + $0x20] sm:$0xff]  ;;  %v428_v7 = vld [vmem:[%s1231_s5 + $0x18] sm:$0xff]  ;;  %v427_v8 = vld [vmem:[%s1231_s5 + $0x10] sm:$0xff]  ;;  %s1250_s1 = sld [smem:[#allocation10_spill]]  ;;  %vm434_vm2 = vcmask 523264   ;;  %vm458_vm3 = vcmask 253952   ;;  %s699_s23 = scalar_lea.hbm %s1239_s13, %s1009_s0 }
  0x26   : > { %v426_v9 = vld [vmem:[%s1231_s5 + $0x8] sm:$0xff]  ;;  %v425_v10 = vld [vmem:[%s1231_s5] sm:$0xff]  ;;  %v486_v23 = vld [vmem:[%s1228_s2 + $0x18] sm:$0xff]  ;;  %s1251_s26 = smov 32   ;;  %s910_s28 = smov 64   ;;  %vm659_vm12 = vcmask 122880  }
  0x27   : > { %447 = vmatpush.msra.mxu0 %v431_v4  ;;  %v433_v14 = vld [vmem:[%s1232_s6] sm:$0x1]  ;;  %v485_v24 = vld [vmem:[%s1228_s2 + $0x10] sm:$0xff]  ;;  %502 = vmatpush.msra.mxu1 %v486_v23  ;;  %v484_v25 = vld [vmem:[%s1228_s2 + $0x8] sm:$0xff]  ;;  %s913_s16 = smov 96   ;;  %vm681_vm13 = vcmask 130048  }
  0x28   : > { %v483_v26 = vld [vmem:[%s1228_s2] sm:$0xff]  ;;  %v522_v39 = vld [vmem:[%s1233_s7 + $0x38] sm:$0xff]  ;;  %v521_v40 = vld [vmem:[%s1233_s7 + $0x30] sm:$0xff]  ;;  %vm683_vm14 = vcmask 392192   ;;  %vm685_vm15 = vcmask 654336   ;;  %s701_s19 = sshll.u32 %s1039_s24, 4  ;;  %s702_s19 = int_to_ptr.vmem [resolvable:$true] %s701_s19 }
  0x29   : > { %v812_v2 = vld [vmem:[#allocation2] ss:$0 sm:$0xff]  ;;  %448 = vmatpush.msra.mxu0 %v430_v5  ;;  %503 = vmatpush.msra.mxu1 %v485_v24  ;;  %v520_v41 = vld [vmem:[%s1233_s7 + $0x28] sm:$0xff]  ;;  %v518_v43 = vld [vmem:[%s1233_s7 + $0x18] sm:$0xff]  ;;  %s703_s3 = sshll.u32 %s699_s23, 4  ;;  %vm687_vm0 = vcmask 916480   ;;  %s704_s3 = int_to_ptr.hbm [resolvable:$true] %s703_s3 }
  0x2a   : > { %420 = vrot.lane.b32.xlu0 %v812_v2, %s1241_s25  ;;  %p410_p11 = scmp.gt.s32.totalorder %s409_s27, 0  ;;  %p751_p12 = scmp.lt.s32.totalorder %s409_s27, 15  ;;  %535 = vmatpush.msra.mxu2 %v522_v39  ;;  %v519_v42 = vld [vmem:[%s1233_s7 + $0x20] sm:$0xff]  ;;  %v517_v44 = vld [vmem:[%s1233_s7 + $0x10] sm:$0xff]  ;;  %v516_v45 = vld [vmem:[%s1233_s7 + $0x8] sm:$0xff] }
  0x2b   : > { %449 = vmatpush.msra.mxu0 %v429_v6  ;;  %504 = vmatpush.msra.mxu1 %v484_v25  ;;  %v515_v47 = vld [vmem:[%s1233_s7] sm:$0xff]  ;;  %v555_v48 = vld [vmem:[%s1235_s9 + $0x38] sm:$0xff]  ;;  %v554_v49 = vld [vmem:[%s1235_s9 + $0x30] sm:$0xff]  ;;  %s856_s0 = sshra.s32 %s704_s3, 4  ;;  %s857_s0 = int_to_ptr.hbm [resolvable:$true] %s856_s0 }
  0x2c   : > { %s1258_s27 = smov (!%p410_p11, %s409_s27), 0  ;;  %536 = vmatpush.msra.mxu2 %v521_v40  ;;  %568 = vmatpush.msra.mxu3 %v555_v48  ;;  %v553_v50 = vld [vmem:[%s1235_s9 + $0x28] sm:$0xff]  ;;  %v552_v51 = vld [vmem:[%s1235_s9 + $0x20] sm:$0xff]  ;;  %v551_v52 = vld [vmem:[%s1235_s9 + $0x18] sm:$0xff]  ;;  %p863_p2 = scmp.lt.s32.totalorder %s857_s0, %s1239_s13 }
  0x2d   : > { %450 = vmatpush.msra.mxu0 %v428_v7  ;;  %s1260_s27 = smov (!%p751_p12, %s1258_s27), 15  ;;  %505 = vmatpush.msra.mxu1 %v483_v26  ;;  %v550_v53 = vld [vmem:[%s1235_s9 + $0x10] sm:$0xff]  ;;  %v549_v56 = vld [vmem:[%s1235_s9 + $0x8] sm:$0xff]  ;;  %v548_v57 = vld [vmem:[%s1235_s9] sm:$0xff] }
  0x2e   : > { %s414_s18 = scalar_lea.vmem %s1250_s1, %s1260_s27  ;;  %537 = vmatpush.msra.mxu2 %v520_v41  ;;  %569 = vmatpush.msra.mxu3 %v554_v49  ;;  %v523_v58 = vld [vmem:[%s1234_s8] sm:$0x1]  ;;  %v813_v2 = vld [vmem:[#allocation3] ss:$0 sm:$0xff]  ;;  %v635_v23 = vld [vmem:[%s1237_s11 + $0x18] sm:$0xff]  ;;  %s911_s27 = smov 48  }
  0x2f   : > { %451 = vmatpush.msra.mxu0 %v427_v8  ;;  %v1077_v11 = vld [vmem:[%s414_s18] sm:$0x1]  ;;  %v634_v24 = vld [vmem:[%s1237_s11 + $0x10] sm:$0xff]  ;;  %651 = vmatpush.msrb.mxu1 %v635_v23  ;;  %v633_v25 = vld [vmem:[%s1237_s11 + $0x8] sm:$0xff] }
  0x30   : > { %538 = vmatpush.msra.mxu2 %v519_v42  ;;  %570 = vmatpush.msra.mxu3 %v553_v50  ;;  %v556_v62 = vld [vmem:[%s1236_s10] sm:$0x1] }
  0x31   : > { %452 = vmatpush.msra.mxu0 %v426_v9  ;;  %652 = vmatpush.msrb.mxu1 %v634_v24  ;;  %v632_v26 = vld [vmem:[%s1237_s11] sm:$0xff] }
  0x32   : > { %539 = vmatpush.msra.mxu2 %v518_v43  ;;  %571 = vmatpush.msra.mxu3 %v552_v51 }
  0x33   : > { %453 = vmatpush.msra.mxu0 %v425_v10  ;;  %653 = vmatpush.msrb.mxu1 %v633_v25 }
  0x34   : > { %540 = vmatpush.msra.mxu2 %v517_v44  ;;  %572 = vmatpush.msra.mxu3 %v551_v52 }
  0x35   : > { %654 = vmatpush.msrb.mxu1 %v632_v26 }
  0x36   : > { %541 = vmatpush.msra.mxu2 %v516_v45  ;;  %573 = vmatpush.msra.mxu3 %v550_v53 }
  0x38   : > { %542 = vmatpush.msra.mxu2 %v515_v47  ;;  %574 = vmatpush.msra.mxu3 %v549_v56 }
  0x3a   : > { %575 = vmatpush.msra.mxu3 %v548_v57 }
  0x9c   : > { %v1079_v12 = vpop.permute.xlu0 %420 }
  0x9d   : > { %v424_v13 = vsel %vm423_vm1, %v1077_v11, %v1079_v12 }
  0x9e   : > { %756 = vmatmul.msk.f32.vlgmr.msra.gmra.mxu0 %vm434_vm2, %v424_v13 }
 0x11b   : > { %v455_v15 = vpop.f32.mrf.mxu0 }
 0x11c   : > { %v456_v16 = vadd.f32 %v455_v15, %v433_v14 }
 0x11e   : > { %v459_v17 = vsel %vm458_vm3, %v456_v16, -inf }
 0x11f   : > { %460 = vmax.xlane.f32.xlu0 %v459_v17 }
 0x192   : > { %v461_v18 = vpop.xlane.xlu0 %460 }
 0x193   : > { %v462_v19 = vsub.f32 %v456_v16, %v461_v18 }
 0x195   : > { %v463_v20 = vmul.f32 1.442695, %v462_v19 }
 0x197   : > { %814 = vpow2.f32 %v463_v20 }
 0x19d   : > { %v815_v21 = vpop.eup %814 }
 0x19e   : > { %v465_v22 = vsel %vm458_vm3, %v815_v21, 0.0 }
 0x19f   : > { %466 = vadd.xlane.f32.xlu1 %v465_v22 }
 0x212   : > { %v467_v27 = vpop.xlane.xlu1 %466 }
 0x213   : > { %816 = vrcp.f32 %v467_v27  ;;  %v479_v31 = vand.u32 2147483648, %v467_v27  ;;  %v477_v33 = vand.u32 2147483647, %v467_v27  ;;  %vm473_vm5 = vweird.f32 %v467_v27 }
 0x215   : > { %v480_v35 = vor.u32 1.1754944e-38, %v479_v31  ;;  %vm478_vm7 = vcmp.eq.f32.partialorder %v477_v33, 8.507059e+37  ;;  %v636_v33 = vld [vmem:[%s1238_s12] sm:$0x1] }
 0x219   : > { %v817_v28 = vpop.eup %816 }
 0x21a   : > { %v469_v29 = vmul.f32 %v817_v28, %v467_v27  ;;  %vm474_vm4 = vweird.f32 %v817_v28 }
 0x21b   : > { %vm475_vm6 = vmor %vm473_vm5, %vm474_vm4 }
 0x21c   : > { %v470_v30 = vsub.f32 1.0, %v469_v29 }
 0x21e   : > { %v471_v32 = vmul.f32 %v817_v28, %v470_v30 }
 0x220   : > { %v472_v34 = vadd.f32 %v817_v28, %v471_v32 }
 0x222   : > { %v476_v36 = vsel %vm475_vm6, %v817_v28, %v472_v34 }
 0x223   : > { %v481_v37 = vsel %vm478_vm7, %v480_v35, %v476_v36 }
 0x224   : > { %v1102_v38 = vmul.f32 %v815_v21, %v481_v37 }
 0x226   : > { %757 = vmatmul.msk.f32.vlgmr.msra.gmra.mxu1 %vm423_vm1, %v1102_v38 }
 0x2a3   : > { %v507_v46 = vpop.f32.mrf.mxu1 }
 0x2a4   : > { %511 = vrot.lane.b32.xlu1 %v507_v46, %s1251_s26 }
 0x316   : > { %v512_v54 = vpop.permute.xlu1 %511 }
 0x317   : > { %v514_v55 = vsel %vm423_vm1, %v1077_v11, %v512_v54 }
 0x318   : > { %758 = vmatmul.msk.f32.vlgmr.msra.gmra.mxu2 %vm434_vm2, %v514_v55 }
 0x39b   : > { %v544_v59 = vpop.f32.mrf.mxu2 }
 0x39c   : > { %v545_v60 = vadd.f32 %v544_v59, %v523_v58 }
 0x39e   : > { %v547_v61 = vsel %vm423_vm1, %v545_v60, %v1079_v12 }
 0x39f   : > { %759 = vmatmul.msk.f32.vlgmr.msra.gmra.mxu3 %vm434_vm2, %v547_v61 }
 0x422   : > { %v577_v63 = vpop.f32.mrf.mxu3 }
 0x423   : > { %v578_v0 = vadd.f32 %v577_v63, %v556_v62 }
 0x425   : > { %818 = vtanh.f32 %v578_v0  ;;  %v760_v3 = vmul.f32 -1.442695, %v578_v0 }
 0x427   : > { %820 = vpow2.f32 %v760_v3 }
 0x42b   : > { %v819_v1 = vpop.eup %818 }
 0x42c   : > { %607 = vrot.lane.b32.xlu2 %v819_v1, %s910_s28 }
 0x42d   : > { %v821_v4 = vpop.eup %820 }
 0x42e   : > { %v583_v5 = vadd.f32 1.0, %v821_v4 }
 0x430   : > { %822 = vrcp.f32 %v583_v5  ;;  %v595_v11 = vand.u32 2147483648, %v583_v5  ;;  %vm589_vm9 = vweird.f32 %v583_v5  ;;  %v593_v12 = vand.u32 2147483647, %v583_v5 }
 0x432   : > { %v596_v14 = vor.u32 1.1754944e-38, %v595_v11  ;;  %vm594_vm11 = vcmp.eq.f32.partialorder %v593_v12, 8.507059e+37 }
 0x434   : > { %602 = vrot.lane.b32.xlu2 %v813_v2, %s1251_s26 }
 0x436   : > { %v823_v6 = vpop.eup %822 }
 0x437   : > { %v585_v7 = vmul.f32 %v823_v6, %v583_v5  ;;  %vm590_vm8 = vweird.f32 %v823_v6 }
 0x438   : > { %vm591_vm10 = vmor %vm589_vm9, %vm590_vm8 }
 0x439   : > { %v586_v8 = vsub.f32 1.0, %v585_v7 }
 0x43b   : > { %v587_v9 = vmul.f32 %v823_v6, %v586_v8 }
 0x43d   : > { %v588_v10 = vadd.f32 %v823_v6, %v587_v9 }
 0x43f   : > { %v592_v13 = vsel %vm591_vm10, %v823_v6, %v588_v10 }
 0x440   : > { %v597_v16 = vsel %vm594_vm11, %v596_v14, %v592_v13 }
 0x486   : > { %v608_v15 = vpop.permute.xlu2 %607 }
 0x487   : > { %v610_v17 = vmul.f32 %v608_v15, %v597_v16 }
 0x489   : > { %612 = vrot.lane.b32.xlu2 %v610_v17, %s1251_s26 }
 0x48e   : > { %v603_v18 = vpop.permute.xlu2 %602 }
 0x48f   : > { %v605_v19 = vmul.f32 %v603_v18, %v597_v16 }
 0x4e3   : > { %v613_v20 = vpop.permute.xlu2 %612 }
 0x4e4   : > { %v615_v21 = vadd.f32 %v613_v20, %v605_v19 }
 0x4e6   : > { %824 = vtanh.f32 %v615_v21 }
 0x4ec   : > { %v825_v22 = vpop.eup %824 }
 0x4ed   : > { %618 = vrot.lane.b32.xlu2 %v825_v22, %s910_s28  ;;  %s912_s28 = smov 16  }
 0x547   : > { %v619_v27 = vpop.permute.xlu2 %618 }
 0x548   : > { %v621_v28 = vmul.f32 %v619_v27, %v597_v16 }
 0x54a   : > { %672 = vrot.lane.b32.xlu0 %v621_v28, %s911_s27  ;;  %623 = vrot.lane.b32.xlu2 %v621_v28, %s1251_s26  ;;  %s914_s26 = smov 80   ;;  %s1252_s27 = sand.u32 1, %s898_s30  }
 0x552   : > { %675 = vrot.lane.b32.xlu0 %v615_v21, %s912_s28  ;;  %s691_s28 = scalar_lea.sflag [#allocation7], %s1252_s27 }
 0x55a   : > { %628 = vrot.lane.b32.xlu0 %v615_v21, %s913_s16  ;;  %s858_s16 = scalar_lea.hbm %s857_s0, 1 }
 0x55b   : > { %p859_p13 = scmp.ne.s32.totalorder %s857_s0, %s858_s16 }
 0x55d   : > { %p860_p0 = pnand %p859_p13, %p1026_p5 }
 0x55f   : > { %p861_p1 = pneg %p860_p0 }
 0x5a4   : > { %v624_v29 = vpop.permute.xlu2 %623 }
 0x5a5   : > { %626 = vst.msk [vmem:[#allocation2] sm:$0x1] %vm458_vm3, %v624_v29  ;;  %761 = vmatmul.msk.f32.vlgmr.msrb.gmra.mxu1 %vm423_vm1, %v624_v29 }
 0x5bc   : > { %v673_v30 = vpop.permute.xlu0 %672 }
 0x5c4   : > { %v676_v31 = vpop.permute.xlu0 %675 }
 0x5cc   : > { %v629_v32 = vpop.permute.xlu0 %628 }
 0x5cd   : > { %631 = vst.msk [vmem:[#allocation3] sm:$0x1] %vm458_vm3, %v629_v32 }
 0x622   : > { %v656_v34 = vpop.f32.mrf.mxu1 }
 0x623   : > { %v657_v35 = vadd.f32 %v656_v34, %v636_v33 }
 0x625   : > { %v660_v36 = vsel %vm659_vm12, %v657_v35, -inf }
 0x626   : > { %661 = vmax.xlane.f32.xlu1 %v660_v36 }
 0x63f   : > { %678 = vrot.lane.b32.xlu1 %v1102_v38, %s914_s26  ;;  %s862_s26 = scalar_lea.hbm %s1239_s13, 6 }
 0x640   : > { %p864_p3 = scmp.lt.s32.totalorder %s862_s26, %s858_s16 }
 0x642   : > { %p865_p4 = por %p864_p3, %p863_p2 }
 0x644   : > { %p866_p7 = pnand %p865_p4, %p861_p1 }
 0x699   : > { %v662_v37 = vpop.xlane.xlu1 %661 }
 0x69a   : > { %v663_v39 = vsub.f32 %v657_v35, %v662_v37 }
 0x69c   : > { %v664_v40 = vmul.f32 1.442695, %v663_v39 }
 0x69e   : > { %826 = vpow2.f32 %v664_v40 }
 0x6a4   : > { %v827_v41 = vpop.eup %826 }
 0x6a5   : > { %v666_v42 = vsel %vm659_vm12, %v827_v41, 0.0 }
 0x6a6   : > { %667 = vadd.xlane.f32.xlu2 %v666_v42 }
 0x6b1   : > { %v679_v47 = vpop.permute.xlu1 %678 }
 0x719   : > { %v668_v43 = vpop.xlane.xlu2 %667 }
 0x71a   : > { %828 = vlog2.f32 %v668_v43 }
 0x720   : > { %v829_v44 = vpop.eup %828 }
 0x721   : > { %v670_v45 = vmul.f32 0.6931472, %v829_v44 }
 0x723   : > { %v671_v38 = vsub.f32 %v663_v39, %v670_v45 }
 0x725   : > { %v682_v46 = vsel %vm681_vm13, %v671_v38, %v673_v30 }
 0x726   : > { %v684_v48 = vsel %vm683_vm14, %v682_v46, %v676_v31 }
 0x727   : > { %v686_v49 = vsel %vm685_vm15, %v684_v48, %v679_v47 }
 0x728   : > { %v688_v50 = vsel %vm687_vm0, %v686_v49, 0.0 }
 0x729   : > { %689 = vst [vmem:[%s1039_s24] sm:$0x1] %v688_v50 }
 0x72a   : > { %869 = shalt.err (!%p866_p7)
}
 0x72b   : > { %766 = dma.vmem_to_hbm [thread:$0]  (%p1026_p5), %s702_s19, 16, %s704_s3, %s691_s28  }
 0x72c PF: > { %p772_p8 = scmp.ge.s32.totalorder %s906_s15, 2  ;;  %s715_s24 = sand.u32 1, %s894_s29  }
 0x72d   : > { %s716_s23 = scalar_lea.sflag [#allocation7], %s715_s24 }
 0x72e   : > { %p769_p9 = pnand %p772_p8, %p1030_p6 }
 0x730   : > { %p770_p10 = pneg %p769_p9 }
 0x732   : > { %889 = dma.done.wait (%p770_p10), %s716_s23, 16  }
 0x733   : > { %891 = vsyncadd (%p770_p10), %s716_s23, 4294967280  ;;  %p31_p11 = scmp.ge.s32.totalorder %s1013_s17, 8   ;;  %s1253_s29 = smov %s898_s30 }
 0x734   : > { %s1254_s30 = smov %s902_s14  ;;  %s1255_s14 = smov %s1024_s20 }
 0x735   : > { %s1256_s15 = smov %s1013_s17  ;;  %33 = sbr.rel (!%p31_p11) target bundleno = 11 (0xb), region = 105 }
 0x73a   :  { %721 = vsyncpa [#allocation7], 1 }
 0x73b   :  { %723 = vsyncpa [#allocation7 + $0x1], 1 }

</bundles_post_ra>
